<compile_context>
chip_gen: v7x
topology: tpu7x:2x2x1
jax: 0.10.0
libtpu: 0.0.40
codegen_flags: <defaults>
</compile_context>

<pallas_src>
import functools

import jax
import jax.numpy as jnp
from jax.experimental import pallas as pl
from jax.experimental.pallas import tpu as pltpu


def _gem_kernel(p_ref, x_ref, o_ref, acc_ref, *, eps, hw_total, tile_hw):
    # p_ref  : (1, 1) float32 in SMEM (learnable scalar exponent)
    # x_ref  : (TILE_NC, TILE_HW) input tile in VMEM
    # o_ref  : (TILE_NC, 1) output tile in VMEM (resident across the k axis)
    # acc_ref: (TILE_NC, 1) f32 scratch accumulator
    k = pl.program_id(1)

    @pl.when(k == 0)
    def _():
        acc_ref[...] = jnp.zeros_like(acc_ref)

    p = p_ref[0, 0]
    x = x_ref[...].astype(jnp.float32)
    xc = jnp.maximum(x, eps)                      # clamp(min=eps) > 0
    xp = jnp.exp(p * jnp.log(xc))                 # x^p via EUP exp/log

    # Mask padded columns of a ragged last H*W chunk so they never enter the sum.
    if hw_total % tile_hw != 0:
        col = jax.lax.broadcasted_iota(jnp.int32, xp.shape, dimension=1)
        valid = (col + k * tile_hw) < hw_total
        xp = jnp.where(valid, xp, 0.0)

    acc_ref[...] += jnp.sum(xp, axis=-1, keepdims=True)

    @pl.when(k == pl.num_programs(1) - 1)
    def _():
        mean = acc_ref[...] * (1.0 / hw_total)    # true H*W, applied exactly once
        o_ref[...] = jnp.exp(jnp.log(mean) / p).astype(o_ref.dtype)


def _choose_tiles(nc, hw, itemsize, target_block_bytes=2 << 20, max_hw_tile=8192):
    """Pick (TILE_NC, TILE_HW) obeying the (8,128) BlockSpec rule, ~2 MiB blocks."""
    # H*W tile: keep the whole row when it is modest, otherwise a
    # multiple-of-128 chunk (last block dim must be /128 or the full extent).
    if hw <= max_hw_tile:
        tile_hw = hw
    else:
        tile_hw = max_hw_tile - (max_hw_tile % 128)
    # Rows per block targeting ~2 MiB (double-buffered by the pipeline).
    rows = max(1, target_block_bytes // max(1, tile_hw * itemsize))
    if rows >= nc:
        tile_nc = nc                               # full extent is always legal
    else:
        tile_nc = max(8, (rows // 8) * 8)          # multiple of 8 (sublane dim)
    return int(tile_nc), int(tile_hw)


def gem_pallas(x, p, eps=1e-6, *, tile_nc=None, tile_hw=None):
    """x: (N, C, H, W); p: scalar (learnable). Returns (N, C, 1, 1). eps must be > 0."""
    N, C, H, W = x.shape
    NC, HW = N * C, H * W
    x2d = x.reshape(NC, HW)
    p_arr = jnp.asarray(p, dtype=jnp.float32).reshape(1, 1)

    auto_nc, auto_hw = _choose_tiles(NC, HW, jnp.dtype(x.dtype).itemsize)
    tile_nc = auto_nc if tile_nc is None else tile_nc
    tile_hw = auto_hw if tile_hw is None else tile_hw

    grid = (pl.cdiv(NC, tile_nc), pl.cdiv(HW, tile_hw))

    itemsize = jnp.dtype(x.dtype).itemsize
    cost = pl.CostEstimate(
        flops=5 * NC * HW,
        transcendentals=2 * NC * HW,
        bytes_accessed=NC * HW * itemsize + NC * itemsize,
    )

    out = pl.pallas_call(
        functools.partial(_gem_kernel, eps=eps, hw_total=HW, tile_hw=tile_hw),
        out_shape=jax.ShapeDtypeStruct((NC, 1), x.dtype),
        grid_spec=pltpu.PrefetchScalarGridSpec(
            num_scalar_prefetch=0,
            grid=grid,
            in_specs=[
                pl.BlockSpec(memory_space=pltpu.MemorySpace.SMEM),      # p scalar
                pl.BlockSpec((tile_nc, tile_hw), lambda i, k: (i, k)),  # x tile
            ],
            out_specs=pl.BlockSpec((tile_nc, 1), lambda i, k: (i, 0)),
            scratch_shapes=[pltpu.VMEM((tile_nc, 1), jnp.float32)],
        ),
        compiler_params=pltpu.CompilerParams(
            dimension_semantics=("parallel", "arbitrary"),
            vmem_limit_bytes=32 * 1024 * 1024,   # headroom, safe on v5e/v6e/v7x
        ),
        cost_estimate=cost,
    )(p_arr, x2d)

    return out.reshape(N, C, 1, 1)


def gem_reference(x, p, eps=1e-6):
    xc = jnp.maximum(x.astype(jnp.float32), eps)
    pooled = jnp.mean(xc ** p, axis=(-2, -1), keepdims=True)
    return (pooled ** (1.0 / p)).astype(x.dtype)


if __name__ == "__main__":
    k1, k2 = jax.random.split(jax.random.PRNGKey(0))
    eps = 1e-6

    # Deterministic parameter init matching GeM.__init__: p = ones(1) * 3
    p_param = jnp.ones((1,), dtype=jnp.float32) * 3.0

    # Primary check: small NCHW input (single-tile path).
    N, C, H, W = 2, 4, 16, 16
    x = jax.random.uniform(k1, (N, C, H, W), dtype=jnp.float32)
    out = jax.block_until_ready(gem_pallas(x, p_param[0], eps=eps))
    ref = gem_reference(x, p_param[0], eps=eps)
    assert out.shape == (N, C, 1, 1), out.shape
    assert jnp.allclose(out, ref, atol=1e-4, rtol=1e-4), float(
        jnp.max(jnp.abs(out - ref))
    )

    # Secondary check: force a multi-tile grid with ragged N*C and ragged H*W
    # chunks to exercise the accumulator / masking / edge-block paths.
    N2, C2, H2, W2 = 2, 32, 13, 13
    x2 = jax.random.uniform(k2, (N2, C2, H2, W2), dtype=jnp.float32)
    out2 = jax.block_until_ready(
        gem_pallas(x2, p_param[0], eps=eps, tile_nc=24, tile_hw=128)
    )
    ref2 = gem_reference(x2, p_param[0], eps=eps)
    assert out2.shape == (N2, C2, 1, 1), out2.shape
    assert jnp.allclose(out2, ref2, atol=1e-4, rtol=1e-4), float(
        jnp.max(jnp.abs(out2 - ref2))
    )

    print("KERNEL_OK")
</pallas_src>

<mosaic_0001>
module attributes {stable_mosaic.version = 11 : i64} {
  func.func @_gem_kernel(%arg0: i32, %arg1: i32, %arg2: memref<1x1xf32, #tpu.memory_space<smem>>, %arg3: memref<8x256xf32, #tpu.memory_space<vmem>>, %arg4: memref<8x1xf32, #tpu.memory_space<vmem>>, %arg5: memref<8x1xf32, #tpu.memory_space<vmem>>) attributes {dimension_semantics = [#tpu.dimension_semantics<parallel>, #tpu.dimension_semantics<arbitrary>], iteration_bounds = array<i64: 1, 1>, scalar_prefetch = 0 : i64, scratch_operands = 1 : i64, tpu.core_type = #tpu.core_type<tc>, window_params = [{transform_indices = @transform_0, window_bounds = array<i64: 1, 1>}, {transform_indices = @transform_1, window_bounds = array<i64: 8, 256>}, {transform_indices = @transform_2, window_bounds = array<i64: 8, 1>}]} {
    %c0_i32 = arith.constant 0 : i32
    %0 = arith.cmpi eq, %arg1, %c0_i32 : i32
    %1 = arith.extui %0 : i1 to i32
    %c0_i32_0 = arith.constant 0 : i32
    %2 = arith.cmpi ne, %1, %c0_i32_0 : i32
    scf.if %2 {
      %cst_11 = arith.constant 0.000000e+00 : f32
      %19 = vector.broadcast %cst_11 : f32 to vector<8x1xf32>
      %c0_12 = arith.constant 0 : index
      %c0_13 = arith.constant 0 : index
      %20 = vector.load %arg5[%c0_12, %c0_13] : memref<8x1xf32, #tpu.memory_space<vmem>>, vector<8x1xf32>
      tpu.vector_store %arg5[%c0_12, %c0_13], %19 {strides = array<i32>} : memref<8x1xf32, #tpu.memory_space<vmem>>, vector<8x1xf32>,
    } else {
    }
    %c0 = arith.constant 0 : index
    %c0_1 = arith.constant 0 : index
    %3 = memref.load %arg2[%c0, %c0_1] : memref<1x1xf32, #tpu.memory_space<smem>>
    %c0_2 = arith.constant 0 : index
    %c0_3 = arith.constant 0 : index
    %4 = vector.load %arg3[%c0_2, %c0_3] : memref<8x256xf32, #tpu.memory_space<vmem>>, vector<8x256xf32>
    %cst = arith.constant 9.99999997E-7 : f32
    %5 = vector.broadcast %cst : f32 to vector<8x256xf32>
    %6 = arith.maximumf %4, %5 : vector<8x256xf32>
    %7 = math.log %6 : vector<8x256xf32>
    %8 = vector.broadcast %3 : f32 to vector<8x256xf32>
    %9 = arith.mulf %8, %7 : vector<8x256xf32>
    %10 = math.exp %9 : vector<8x256xf32>
    %c0_4 = arith.constant 0 : index
    %c0_5 = arith.constant 0 : index
    %11 = vector.load %arg5[%c0_4, %c0_5] : memref<8x1xf32, #tpu.memory_space<vmem>>, vector<8x1xf32>
    %cst_6 = arith.constant dense<0.000000e+00> : vector<8xf32>
    %12 = vector.multi_reduction <add>, %10, %cst_6 [1] : vector<8x256xf32> to vector<8xf32>
    %13 = vector.shape_cast %12 : vector<8xf32> to vector<8x1xf32>
    %14 = arith.addf %11, %13 : vector<8x1xf32>
    %c0_7 = arith.constant 0 : index
    %c0_8 = arith.constant 0 : index
    %15 = vector.load %arg5[%c0_7, %c0_8] : memref<8x1xf32, #tpu.memory_space<vmem>>, vector<8x1xf32>
    tpu.vector_store %arg5[%c0_7, %c0_8], %14 {strides = array<i32>} : memref<8x1xf32, #tpu.memory_space<vmem>>, vector<8x1xf32>,
    %c0_i32_9 = arith.constant 0 : i32
    %16 = arith.cmpi eq, %arg1, %c0_i32_9 : i32
    %17 = arith.extui %16 : i1 to i32
    %c0_i32_10 = arith.constant 0 : i32
    %18 = arith.cmpi ne, %17, %c0_i32_10 : i32
    scf.if %18 {
      %c0_11 = arith.constant 0 : index
      %c0_12 = arith.constant 0 : index
      %19 = vector.load %arg5[%c0_11, %c0_12] : memref<8x1xf32, #tpu.memory_space<vmem>>, vector<8x1xf32>
      %cst_13 = arith.constant 3.906250e-03 : f32
      %20 = vector.broadcast %cst_13 : f32 to vector<8x1xf32>
      %21 = arith.mulf %19, %20 : vector<8x1xf32>
      %22 = math.log %21 : vector<8x1xf32>
      %23 = vector.broadcast %3 : f32 to vector<8x1xf32>
      %24 = arith.divf %22, %23 : vector<8x1xf32>
      %25 = math.exp %24 : vector<8x1xf32>
      %c0_14 = arith.constant 0 : index
      %c0_15 = arith.constant 0 : index
      %26 = vector.load %arg4[%c0_14, %c0_15] : memref<8x1xf32, #tpu.memory_space<vmem>>, vector<8x1xf32>
      tpu.vector_store %arg4[%c0_14, %c0_15], %25 {strides = array<i32>} : memref<8x1xf32, #tpu.memory_space<vmem>>, vector<8x1xf32>,
    } else {
    }
    return
  }
  func.func @transform_0(%arg0: i32, %arg1: i32) -> (i32, i32) {
    %c0_i32 = arith.constant 0 : i32
    %c0_i32_0 = arith.constant 0 : i32
    %c0_i32_1 = arith.constant 0 : i32
    return %c0_i32, %c0_i32_0 : i32, i32
  }
  func.func @transform_1(%arg0: i32, %arg1: i32) -> (i32, i32) {
    %c0_i32 = arith.constant 0 : i32
    return %arg0, %arg1 : i32, i32
  }
  func.func @transform_2(%arg0: i32, %arg1: i32) -> (i32, i32) {
    %c0_i32 = arith.constant 0 : i32
    %c0_i32_0 = arith.constant 0 : i32
    return %arg0, %c0_i32 : i32, i32
  }
}

</mosaic_0001>

<bundles_post_ra>
// kernel: tpu_custom_call.1
= control target key start
LH: loop header
LB: loop body
LE: loop exit
PB: predicated region body
PF: predicated region fallthrough
CT: control target
= control target key end

     0   :  { %8 = vsyncpa [#allocation5], 0  ;;  %s110_s9 = smov [#allocation4]   ;;  %s148_s0 = inlined_call_operand.<no memory space> [shape: f32[1,1], index: 0, kind: input, shape index: {}]   ;;  %s149_s1 = inlined_call_operand.hbm [shape: f32[8,256], index: 1, kind: input, shape index: {}]   ;;  %s150_s2 = inlined_call_operand.vmem [shape: f32[8,1], index: 2, kind: output, shape index: {}]  }
   0x1   :  { %s17_s10 = sshll.u32 %s110_s9, 4  ;;  %s86_s13 = scalar_lea.hbm %s149_s1, 256  ;;  %s18_s10 = int_to_ptr.vmem [resolvable:$true] %s17_s10 }
   0x2   :  { %p87_p0 = scmp.ne.s32.totalorder %s149_s1, %s86_s13  ;;  %p90_p1 = scmp.lt.u32.totalorder %s86_s13, %s149_s1 }
   0x4   :  { %p92_p2 = pnand %p90_p1, %p87_p0 }
   0x6   :  { %95 = shalt.err (!%p92_p2)
}
   0x7   :  { %s96_s18 = scalar_lea.vmem %s18_s10, 256  ;;  %p101_p4 = scmp.lt.s32.totalorder %s18_s10, %s18_s10 }
   0x8   :  { %p97_p3 = scmp.ne.s32.totalorder %s18_s10, %s96_s18  ;;  %p102_p5 = scmp.lt.s32.totalorder %s96_s18, %s96_s18 }
   0xa   :  { %p103_p6 = por %p102_p5, %p101_p4 }
   0xc   :  { %p104_p7 = pnand %p103_p6, %p97_p3 }
   0xe   :  { %107 = shalt.err (!%p104_p7)
}
   0xf   :  { %20 = dma.hbm_to_vmem [thread:$0]  %s149_s1, 256, %s18_s10, [#allocation5]  }
  0x10   :  { %108 = dma.done.wait [#allocation5], 256  }
  0x11   :  { %109 = vsyncadd [#allocation5], 4294967040  ;;  %vm28_vm0 = vcmask 7168   ;;  %v111_v0 = vmov 0.0   ;;  %v31_v1 = vld [vmem:[#allocation4] sm:$0xff]  ;;  %v32_v2 = vld [vmem:[#allocation4 + $0x8] sm:$0xff]  ;;  %v39_v6 = vstv %s148_s0 }
  0x12   :  { %29 = vst.msk [vmem:[#allocation2] sm:$0xff] %vm28_vm0, %v111_v0  ;;  %v33_v3 = vmax.f32 %v31_v1, 1e-06  ;;  %v34_v4 = vmax.f32 %v32_v2, 1e-06 }
  0x14   :  { %72 = vlog2.f32 %v33_v3 }
  0x15   :  { %74 = vlog2.f32 %v34_v4 }
  0x19   :  { %v46_v17 = vld [vmem:[#allocation2] sm:$0xff] }
  0x1e   :  { %v73_v5 = vpop.eup %72 }
  0x1f   :  { %v75_v7 = vpop.eup %74  ;;  %v36_v8 = vmul.f32 0.6931472, %v73_v5 }
  0x20   :  { %v38_v9 = vmul.f32 0.6931472, %v75_v7 }
  0x21   :  { %v40_v10 = vmul.f32 %v39_v6, %v36_v8 }
  0x22   :  { %v41_v11 = vmul.f32 %v39_v6, %v38_v9 }
  0x23   :  { %v42_v12 = vmul.f32 1.442695, %v40_v10 }
  0x24   :  { %v44_v13 = vmul.f32 1.442695, %v41_v11 }
  0x25   :  { %76 = vpow2.f32 %v42_v12 }
  0x26   :  { %78 = vpow2.f32 %v44_v13 }
  0x27   :  { %80 = vrcp.f32 %v39_v6 }
  0x2f   :  { %v77_v14 = vpop.eup %76 }
  0x30   :  { %v79_v15 = vpop.eup %78 }
  0x31   :  { %v47_v16 = vadd.f32 %v79_v15, %v77_v14  ;;  %v81_v22 = vpop.eup %80 }
  0x33   :  { %48 = vadd.xlane.f32.xlu0 %v47_v16 }
  0xc0   :  { %v49_v18 = vpop.xlane.xlu0 %48 }
  0xc1   :  { %v50_v19 = vadd.f32 %v49_v18, %v46_v17 }
  0xc3   :  { %52 = vst.msk [vmem:[#allocation2] sm:$0xff] %vm28_vm0, %v50_v19 }
  0xca   :  { %v56_v20 = vld [vmem:[#allocation2] sm:$0xff] }
  0xcb   :  { %v57_v21 = vmul.f32 0.00390625, %v56_v20 }
  0xcd   :  { %82 = vlog2.f32 %v57_v21 }
  0xd7   :  { %v83_v23 = vpop.eup %82 }
  0xd8   :  { %v59_v24 = vmul.f32 0.6931472, %v83_v23 }
  0xda   :  { %v61_v25 = vmul.f32 %v81_v22, %v59_v24 }
  0xdc   :  { %v62_v26 = vmul.f32 1.442695, %v61_v25 }
  0xde   :  { %84 = vpow2.f32 %v62_v26 }
  0xe8   :  { %v85_v27 = vpop.eup %84 }
  0xe9   :  { %64 = vst.msk [vmem:[%s150_s2] sm:$0xff] %vm28_vm0, %v85_v27 }
  0xea   :  { %69 = vsyncpa [#allocation5], 1 }

</bundles_post_ra>
